<compile_context>
chip_gen: v6e
topology: v6e:2x2x1
jax: 0.10.0
libtpu: 0.0.40
codegen_flags: <defaults>
</compile_context>

<pallas_src>
import jax
import jax.numpy as jnp
from jax.experimental import pallas as pl
from jax.experimental.pallas import tpu as pltpu

OBS_DIM = 2      # env.observation_space.shape[0] for MountainCar-v0
HIDDEN = 100
N_ACTIONS = 3    # env.action_space.n for MountainCar-v0


def _round_up(x, m):
    return (x + m - 1) // m * m


def _net_kernel(x_ref, w_ref, o_ref):
    # x_ref: (tb, OBS_DIM)        f32 VMEM  (batch tile, no column padding)
    # w_ref: (OBS_DIM, N_ACTIONS) f32 VMEM  (folded fc2@fc1, transposed, resident)
    # o_ref: (tb, N_ACTIONS)      f32 VMEM  (minimal-width logits tile)
    #
    # K=2, N=3: do the contraction on the VPU as broadcast-FMAs; no MXU, no
    # (8,128) padding of the feature dims required.
    x = x_ref[...]
    w = w_ref[...]
    acc = x[:, 0:1] * w[0:1, :]
    for k in range(1, OBS_DIM):                 # statically unrolled (OBS_DIM == 2)
        acc = acc + x[:, k:k + 1] * w[k:k + 1, :]
    o_ref[...] = acc


def init_params(key):
    """Deterministic init matching torch.nn.Linear default:
    U(-1/sqrt(fan_in), 1/sqrt(fan_in)), PyTorch layout (out_features, in_features)."""
    k1, k2 = jax.random.split(key)
    b1 = 1.0 / jnp.sqrt(jnp.float32(OBS_DIM))
    b2 = 1.0 / jnp.sqrt(jnp.float32(HIDDEN))
    w1 = jax.random.uniform(k1, (HIDDEN, OBS_DIM), jnp.float32, -b1, b1)
    w2 = jax.random.uniform(k2, (N_ACTIONS, HIDDEN), jnp.float32, -b2, b2)
    return w1, w2


def fold_params(w1, w2):
    """Fold fc1/fc2 into one (OBS_DIM, N_ACTIONS) weight so the kernel computes
    x @ W with no transpose.

    NOTE: this fold is exact ONLY because `Net` has no bias and no activation
    between fc1 and fc2; if the module ever gains a ReLU/bias, this must be
    replaced by a true two-matmul kernel.
    """
    assert w1.shape == (HIDDEN, OBS_DIM) and w2.shape == (N_ACTIONS, HIDDEN)
    return (w2 @ w1).T.astype(jnp.float32)       # (OBS_DIM, N_ACTIONS)


def net_forward(x, w_folded, *, block_b=512):
    """Forward pass of `Net`.

    x:        (B, OBS_DIM) f32
    w_folded: (OBS_DIM, N_ACTIONS) f32 from fold_params(w1, w2)
    returns   (B, N_ACTIONS) f32, identical (up to f32 rounding) to
              (x @ W1.T) @ W2.T
    """
    B = x.shape[0]
    block_b = max(8, _round_up(int(block_b), 8))   # keep sublane block dim legal

    # Tight batch tiling: minimise padded rows (<8 wasted), and give v7x's two
    # TensorCores at least 2 grid steps once each still gets >= block_b rows.
    n_tiles = max(1, -(-B // block_b))
    if B >= 2 * block_b:
        n_tiles = max(n_tiles, 2)
    tb = _round_up(-(-B // n_tiles), 8)
    b_pad = _round_up(B, tb)

    # Only the batch dimension is padded (feature dims keep their exact,
    # "equal to full array dim" sizes); skip the pad entirely when unneeded.
    x_in = x if b_pad == B else jnp.pad(x, ((0, b_pad - B), (0, 0)))

    out = pl.pallas_call(
        _net_kernel,
        out_shape=jax.ShapeDtypeStruct((b_pad, N_ACTIONS), jnp.float32),
        grid=(b_pad // tb,),
        in_specs=[
            pl.BlockSpec((tb, OBS_DIM), lambda i: (i, 0)),         # x: batch-tiled
            pl.BlockSpec((OBS_DIM, N_ACTIONS), lambda i: (0, 0)),  # weight: resident
        ],
        out_specs=pl.BlockSpec((tb, N_ACTIONS), lambda i: (i, 0)),
        compiler_params=pltpu.CompilerParams(
            dimension_semantics=("parallel",),  # megacore-shardable on v7x
        ),
    )(x_in, w_folded)

    return out[:B] if b_pad != B else out


if __name__ == "__main__":
    key = jax.random.PRNGKey(0)
    kx, kp, kx2 = jax.random.split(key, 3)

    w1, w2 = init_params(kp)
    w_folded = fold_params(w1, w2)

    fwd = jax.jit(net_forward, static_argnames=("block_b",))

    # Small rollout-style batch (single grid step, batch padded 2 -> 8).
    x_small = jax.random.normal(kx, (2, OBS_DIM), jnp.float32)
    out_small = fwd(x_small, w_folded)
    jax.block_until_ready(out_small)

    # Larger evaluation batch: default block_b=512 -> 2 tiles of 320 rows,
    # zero batch padding, 2 grid steps (megacore-shardable).
    x_big = jax.random.normal(kx2, (640, OBS_DIM), jnp.float32)
    out_big = fwd(x_big, w_folded)
    jax.block_until_ready(out_big)

    # Reference check against the unfolded two-matmul PyTorch-style forward.
    for xv, outv in ((x_small, out_small), (x_big, out_big)):
        ref = (xv @ w1.T) @ w2.T
        assert outv.shape == ref.shape
        assert jnp.allclose(outv, ref, atol=1e-5, rtol=1e-4), float(
            jnp.max(jnp.abs(outv - ref))
        )

    print("KERNEL_OK")
</pallas_src>

<mosaic_0001>
module attributes {stable_mosaic.version = 11 : i64} {
  func.func @_net_kernel(%arg0: i32, %arg1: memref<8x2xf32, #tpu.memory_space<vmem>>, %arg2: memref<2x3xf32, #tpu.memory_space<vmem>>, %arg3: memref<8x3xf32, #tpu.memory_space<vmem>>) attributes {dimension_semantics = [#tpu.dimension_semantics<parallel>], iteration_bounds = array<i64: 1>, scalar_prefetch = 0 : i64, scratch_operands = 0 : i64, tpu.core_type = #tpu.core_type<tc>, window_params = [{transform_indices = @transform_0, window_bounds = array<i64: 8, 2>}, {pipeline_mode = #tpu.pipeline_mode<synchronous>, transform_indices = @transform_1, window_bounds = array<i64: 2, 3>}, {transform_indices = @transform_2, window_bounds = array<i64: 8, 3>}]} {
    %c0 = arith.constant 0 : index
    %c0_0 = arith.constant 0 : index
    %0 = vector.load %arg1[%c0, %c0_0] : memref<8x2xf32, #tpu.memory_space<vmem>>, vector<8x2xf32>
    %c0_1 = arith.constant 0 : index
    %c0_2 = arith.constant 0 : index
    %1 = vector.load %arg2[%c0_1, %c0_2] : memref<2x3xf32, #tpu.memory_space<vmem>>, vector<2x3xf32>
    %2 = vector.extract_strided_slice %0 {offsets = [0, 0], sizes = [8, 1], strides = [1, 1]} : vector<8x2xf32> to vector<8x1xf32>
    %3 = vector.extract_strided_slice %1 {offsets = [0, 0], sizes = [1, 3], strides = [1, 1]} : vector<2x3xf32> to vector<1x3xf32>
    %4 = vector.broadcast %2 : vector<8x1xf32> to vector<8x3xf32>
    %5 = vector.broadcast %3 : vector<1x3xf32> to vector<8x3xf32>
    %6 = arith.mulf %4, %5 : vector<8x3xf32>
    %7 = vector.extract_strided_slice %0 {offsets = [0, 1], sizes = [8, 1], strides = [1, 1]} : vector<8x2xf32> to vector<8x1xf32>
    %8 = vector.extract_strided_slice %1 {offsets = [1, 0], sizes = [1, 3], strides = [1, 1]} : vector<2x3xf32> to vector<1x3xf32>
    %9 = vector.broadcast %7 : vector<8x1xf32> to vector<8x3xf32>
    %10 = vector.broadcast %8 : vector<1x3xf32> to vector<8x3xf32>
    %11 = arith.mulf %9, %10 : vector<8x3xf32>
    %12 = arith.addf %6, %11 : vector<8x3xf32>
    %c0_3 = arith.constant 0 : index
    %c0_4 = arith.constant 0 : index
    %13 = vector.load %arg3[%c0_3, %c0_4] : memref<8x3xf32, #tpu.memory_space<vmem>>, vector<8x3xf32>
    tpu.vector_store %arg3[%c0_3, %c0_4], %12 {strides = array<i32>} : memref<8x3xf32, #tpu.memory_space<vmem>>, vector<8x3xf32>,
    return
  }
  func.func @transform_0(%arg0: i32) -> (i32, i32) {
    %c0_i32 = arith.constant 0 : i32
    %c0_i32_0 = arith.constant 0 : i32
    return %arg0, %c0_i32 : i32, i32
  }
  func.func @transform_1(%arg0: i32) -> (i32, i32) {
    %c0_i32 = arith.constant 0 : i32
    %c0_i32_0 = arith.constant 0 : i32
    %c0_i32_1 = arith.constant 0 : i32
    return %c0_i32, %c0_i32_0 : i32, i32
  }
  func.func @transform_2(%arg0: i32) -> (i32, i32) {
    %c0_i32 = arith.constant 0 : i32
    %c0_i32_0 = arith.constant 0 : i32
    return %arg0, %c0_i32 : i32, i32
  }
}

</mosaic_0001>

<bundles_post_ra>
// kernel: net_forward.1
= control target key start
LH: loop header
LB: loop body
LE: loop exit
PB: predicated region body
PF: predicated region fallthrough
CT: control target
= control target key end

     0   :  { %v43_v0 = vmov 0   ;;  %v44_v2 = vmov 1   ;;  %v18_v3 = vlaneseq  ;;  %vm33_vm0 = vcmask 23552   ;;  %s69_s0 = inlined_call_operand.vmem [shape: f32[8,2], index: 0, kind: input, shape index: {}]   ;;  %s70_s1 = inlined_call_operand.vmem [shape: f32[2,3], index: 1, kind: input, shape index: {}]   ;;  %s71_s2 = inlined_call_operand.vmem [shape: f32[8,3], index: 2, kind: output, shape index: {}]  }
   0x1   :  { %41 = vset.pattern.permute.xlu0 %v43_v0  ;;  %v11_v1 = vld [vmem:[%s69_s0] sm:$0xff] }
   0x2   :  { %15 = vperm.xlu0 %41, %v11_v1   ;;  %v19_v4 = vshrl.u32 %v18_v3, 7  ;;  %v12_v7 = vld [vmem:[%s70_s1] sm:$0x3] }
   0x4   :  { %v20_v5 = vsub.s32 0, %v19_v4  ;;  %v29_v6 = vsub.s32 1, %v19_v4 }
   0x6   :  { %42 = vset.pattern.permute.xlu0 %v44_v2  ;;  %v21_v9 = vrot.slane %v12_v7, %v20_v5  ;;  %v30_v10 = vrot.slane %v12_v7, %v29_v6 }
   0x7   :  { %24 = vperm.xlu0 %42, %v11_v1  }
  0x7d   :  { %v16_v8 = vpop.permute.xlu0 %15 }
  0x7e   :  { %v22_v12 = vmul.f32 %v21_v9, %v16_v8 }
  0x82   :  { %v25_v11 = vpop.permute.xlu0 %24 }
  0x83   :  { %v31_v13 = vmul.f32 %v30_v10, %v25_v11 }
  0x85   :  { %v32_v14 = vadd.f32 %v31_v13, %v22_v12 }
  0x87   :  { %34 = vst.msk [vmem:[%s71_s2] sm:$0xff] %vm33_vm0, %v32_v14 }

</bundles_post_ra>
